<compile_context>
chip_gen: v6e
topology: v6e:2x2x1
jax: 0.10.0
libtpu: 0.0.40
codegen_flags: <defaults>
</compile_context>

<pallas_src>
import jax
import jax.numpy as jnp
from jax.experimental import pallas as pl
from jax.experimental.pallas import tpu as pltpu


def _color_preserve_kernel(vis_ref, ir_ref,
                           wv_ref, bv_ref,
                           wi_ref, bi_ref,
                           wfv_ref, wfi_ref, bf_ref,
                           out_ref):
    vis = vis_ref[...]                                    # (3, TN)
    ir = ir_ref[...]                                      # (3, TN)

    # vis_feat = relu(1x1 conv):  (C,3) @ (3,TN) + (C,1)
    vis_feat = jnp.maximum(
        jnp.dot(wv_ref[...], vis, preferred_element_type=jnp.float32)
        + bv_ref[...], 0.0)                               # (C, TN)
    ir_feat = jnp.maximum(
        jnp.dot(wi_ref[...], ir, preferred_element_type=jnp.float32)
        + bi_ref[...], 0.0)                               # (C, TN)

    # fusion conv on concat([vis_feat, ir_feat]) == split-weight matmuls
    fused = (jnp.dot(wfv_ref[...], vis_feat, preferred_element_type=jnp.float32)
             + jnp.dot(wfi_ref[...], ir_feat, preferred_element_type=jnp.float32)
             + bf_ref[...])                               # (3, TN)

    color = jax.nn.sigmoid(fused)
    out_ref[...] = (color * vis + (1.0 - color) * ir).astype(out_ref.dtype)


def color_preserve_block(vis, ir, params, *, tile_n=16384):
    """vis, ir: (B, 3, H, W) float32. params as produced by init_params."""
    B, c_in, H, W = vis.shape
    assert c_in == 3
    hw = H * W

    # NCHW viewed as (B, 3, H*W): pure reshape, no transpose / pad / extra HBM
    # traffic in the wrapper.
    vis_px = vis.reshape(B, 3, hw)
    ir_px = ir.reshape(B, 3, hw)

    # Lane-dense pixel tile: multiple of 128, clamped to the full extent for
    # small inputs (block last dim must be a multiple of 128 or the full dim).
    tile_n = max(128, (tile_n // 128) * 128)
    if tile_n >= hw:
        tile_n = hw
    n_tiles = pl.cdiv(hw, tile_n)     # ragged tail handled by Pallas masking

    wv, bv, wi, bi, wf, bf = params
    ch = wv.shape[1]
    # Orient weights so the matmuls directly produce (channels, pixels) tiles.
    wv_t = wv.T                       # (C, 3)
    wi_t = wi.T                       # (C, 3)
    wfv_t = wf[:ch].T                 # (3, C)   split fusion weight: no concat
    wfi_t = wf[ch:].T                 # (3, C)
    bv2 = bv.reshape(-1, 1)           # (C, 1)  -> per-sublane broadcast
    bi2 = bi.reshape(-1, 1)           # (C, 1)
    bf2 = bf.reshape(-1, 1)           # (3, 1)

    px_spec = pl.BlockSpec((None, 3, tile_n), lambda b, i: (b, 0, i))
    full = lambda a: pl.BlockSpec(a.shape, lambda b, i: (0, 0))

    out = pl.pallas_call(
        _color_preserve_kernel,
        out_shape=jax.ShapeDtypeStruct((B, 3, hw), vis.dtype),
        grid_spec=pltpu.PrefetchScalarGridSpec(
            num_scalar_prefetch=0,
            grid=(B, n_tiles),
            in_specs=[px_spec, px_spec,
                      full(wv_t), full(bv2),
                      full(wi_t), full(bi2),
                      full(wfv_t), full(wfi_t), full(bf2)],
            out_specs=px_spec),
        compiler_params=pltpu.CompilerParams(
            dimension_semantics=("parallel", "parallel"),
            vmem_limit_bytes=32 * 1024 * 1024),
    )(vis_px, ir_px, wv_t, bv2, wi_t, bi2, wfv_t, wfi_t, bf2)

    return out.reshape(B, 3, H, W)    # pure reshape back to NCHW


def init_params(key, channels=32):
    """Deterministic synthetic params. Weights stored as (in, out) matrices
    (i.e. transposed, squeezed PyTorch Conv2d 1x1 weights)."""
    k = jax.random.split(key, 6)
    wv = jax.random.normal(k[0], (3, channels), jnp.float32) * 0.2
    bv = jax.random.normal(k[1], (channels,), jnp.float32) * 0.05
    wi = jax.random.normal(k[2], (3, channels), jnp.float32) * 0.2
    bi = jax.random.normal(k[3], (channels,), jnp.float32) * 0.05
    wf = jax.random.normal(k[4], (2 * channels, 3), jnp.float32) * 0.1
    bf = jax.random.normal(k[5], (3,), jnp.float32) * 0.05
    return (wv, bv, wi, bi, wf, bf)


def _reference(vis, ir, params):
    """Pure-JAX reference matching the PyTorch forward."""
    wv, bv, wi, bi, wf, bf = params
    vis_px = jnp.transpose(vis, (0, 2, 3, 1))
    ir_px = jnp.transpose(ir, (0, 2, 3, 1))
    vis_feat = jax.nn.relu(vis_px @ wv + bv)
    ir_feat = jax.nn.relu(ir_px @ wi + bi)
    concat = jnp.concatenate([vis_feat, ir_feat], axis=-1)
    color = jax.nn.sigmoid(concat @ wf + bf)
    out = color * vis_px + (1.0 - color) * ir_px
    return jnp.transpose(out, (0, 3, 1, 2))


if __name__ == "__main__":
    key = jax.random.PRNGKey(0)
    kp, kv, ki = jax.random.split(key, 3)

    channels = 32
    B, H, W = 2, 16, 16
    vis = jax.random.uniform(kv, (B, 3, H, W), jnp.float32)
    ir = jax.random.uniform(ki, (B, 3, H, W), jnp.float32)
    params = init_params(kp, channels=channels)

    ref = _reference(vis, ir, params)

    # Default (single large lane-dense tile per batch image).
    out = jax.block_until_ready(color_preserve_block(vis, ir, params))
    assert out.shape == (B, 3, H, W)
    assert jnp.allclose(out, ref, atol=1e-5, rtol=1e-5), "mismatch vs reference"

    # Multi-tile grid along the pixel axis (exercises the tiled path).
    out2 = jax.block_until_ready(color_preserve_block(vis, ir, params, tile_n=128))
    assert jnp.allclose(out2, ref, atol=1e-5, rtol=1e-5), "mismatch (tiled) vs reference"

    print("KERNEL_OK")
</pallas_src>

<mosaic_0001>
module attributes {stable_mosaic.version = 11 : i64} {
  func.func @_color_preserve_kernel(%arg0: i32, %arg1: i32, %arg2: memref<1x3x256xf32, #tpu.memory_space<vmem>>, %arg3: memref<1x3x256xf32, #tpu.memory_space<vmem>>, %arg4: memref<32x3xf32, #tpu.memory_space<vmem>>, %arg5: memref<32x1xf32, #tpu.memory_space<vmem>>, %arg6: memref<32x3xf32, #tpu.memory_space<vmem>>, %arg7: memref<32x1xf32, #tpu.memory_space<vmem>>, %arg8: memref<3x32xf32, #tpu.memory_space<vmem>>, %arg9: memref<3x32xf32, #tpu.memory_space<vmem>>, %arg10: memref<3x1xf32, #tpu.memory_space<vmem>>, %arg11: memref<1x3x256xf32, #tpu.memory_space<vmem>>) attributes {dimension_semantics = [#tpu.dimension_semantics<parallel>, #tpu.dimension_semantics<parallel>], iteration_bounds = array<i64: 2, 1>, scalar_prefetch = 0 : i64, scratch_operands = 0 : i64, tpu.core_type = #tpu.core_type<tc>, window_params = [{transform_indices = @transform_0, window_bounds = array<i64: 1, 3, 256>}, {transform_indices = @transform_1, window_bounds = array<i64: 1, 3, 256>}, {pipeline_mode = #tpu.pipeline_mode<synchronous>, transform_indices = @transform_2, window_bounds = array<i64: 32, 3>}, {pipeline_mode = #tpu.pipeline_mode<synchronous>, transform_indices = @transform_3, window_bounds = array<i64: 32, 1>}, {pipeline_mode = #tpu.pipeline_mode<synchronous>, transform_indices = @transform_4, window_bounds = array<i64: 32, 3>}, {pipeline_mode = #tpu.pipeline_mode<synchronous>, transform_indices = @transform_5, window_bounds = array<i64: 32, 1>}, {pipeline_mode = #tpu.pipeline_mode<synchronous>, transform_indices = @transform_6, window_bounds = array<i64: 3, 32>}, {pipeline_mode = #tpu.pipeline_mode<synchronous>, transform_indices = @transform_7, window_bounds = array<i64: 3, 32>}, {pipeline_mode = #tpu.pipeline_mode<synchronous>, transform_indices = @transform_8, window_bounds = array<i64: 3, 1>}, {transform_indices = @transform_9, window_bounds = array<i64: 1, 3, 256>}]} {
    %c0 = arith.constant 0 : index
    %c0_0 = arith.constant 0 : index
    %c0_1 = arith.constant 0 : index
    %0 = vector.load %arg2[%c0, %c0_0, %c0_1] : memref<1x3x256xf32, #tpu.memory_space<vmem>>, vector<1x3x256xf32>
    %1 = vector.shape_cast %0 : vector<1x3x256xf32> to vector<3x256xf32>
    %c0_2 = arith.constant 0 : index
    %c0_3 = arith.constant 0 : index
    %c0_4 = arith.constant 0 : index
    %2 = vector.load %arg3[%c0_2, %c0_3, %c0_4] : memref<1x3x256xf32, #tpu.memory_space<vmem>>, vector<1x3x256xf32>
    %3 = vector.shape_cast %2 : vector<1x3x256xf32> to vector<3x256xf32>
    %c0_5 = arith.constant 0 : index
    %c0_6 = arith.constant 0 : index
    %4 = vector.load %arg4[%c0_5, %c0_6] : memref<32x3xf32, #tpu.memory_space<vmem>>, vector<32x3xf32>
    %cst = arith.constant dense<0.000000e+00> : vector<32x256xf32>
    %5 = tpu.matmul %4, %1, %cst {dimension_numbers = #tpu.dot_dimension_numbers<[1], [0], [0], [1], [0, 0, 1, 1], [], []>} : vector<32x3xf32>, vector<3x256xf32>, vector<32x256xf32> -> vector<32x256xf32>
    %c0_7 = arith.constant 0 : index
    %c0_8 = arith.constant 0 : index
    %6 = vector.load %arg5[%c0_7, %c0_8] : memref<32x1xf32, #tpu.memory_space<vmem>>, vector<32x1xf32>
    %7 = vector.broadcast %6 : vector<32x1xf32> to vector<32x256xf32>
    %8 = arith.addf %5, %7 : vector<32x256xf32>
    %cst_9 = arith.constant 0.000000e+00 : f32
    %9 = vector.broadcast %cst_9 : f32 to vector<32x256xf32>
    %10 = arith.maximumf %8, %9 : vector<32x256xf32>
    %c0_10 = arith.constant 0 : index
    %c0_11 = arith.constant 0 : index
    %11 = vector.load %arg6[%c0_10, %c0_11] : memref<32x3xf32, #tpu.memory_space<vmem>>, vector<32x3xf32>
    %cst_12 = arith.constant dense<0.000000e+00> : vector<32x256xf32>
    %12 = tpu.matmul %11, %3, %cst_12 {dimension_numbers = #tpu.dot_dimension_numbers<[1], [0], [0], [1], [0, 0, 1, 1], [], []>} : vector<32x3xf32>, vector<3x256xf32>, vector<32x256xf32> -> vector<32x256xf32>
    %c0_13 = arith.constant 0 : index
    %c0_14 = arith.constant 0 : index
    %13 = vector.load %arg7[%c0_13, %c0_14] : memref<32x1xf32, #tpu.memory_space<vmem>>, vector<32x1xf32>
    %14 = vector.broadcast %13 : vector<32x1xf32> to vector<32x256xf32>
    %15 = arith.addf %12, %14 : vector<32x256xf32>
    %cst_15 = arith.constant 0.000000e+00 : f32
    %16 = vector.broadcast %cst_15 : f32 to vector<32x256xf32>
    %17 = arith.maximumf %15, %16 : vector<32x256xf32>
    %c0_16 = arith.constant 0 : index
    %c0_17 = arith.constant 0 : index
    %18 = vector.load %arg8[%c0_16, %c0_17] : memref<3x32xf32, #tpu.memory_space<vmem>>, vector<3x32xf32>
    %cst_18 = arith.constant dense<0.000000e+00> : vector<3x256xf32>
    %19 = tpu.matmul %18, %10, %cst_18 {dimension_numbers = #tpu.dot_dimension_numbers<[1], [0], [0], [1], [0, 0, 1, 1], [], []>} : vector<3x32xf32>, vector<32x256xf32>, vector<3x256xf32> -> vector<3x256xf32>
    %c0_19 = arith.constant 0 : index
    %c0_20 = arith.constant 0 : index
    %20 = vector.load %arg9[%c0_19, %c0_20] : memref<3x32xf32, #tpu.memory_space<vmem>>, vector<3x32xf32>
    %cst_21 = arith.constant dense<0.000000e+00> : vector<3x256xf32>
    %21 = tpu.matmul %20, %17, %cst_21 {dimension_numbers = #tpu.dot_dimension_numbers<[1], [0], [0], [1], [0, 0, 1, 1], [], []>} : vector<3x32xf32>, vector<32x256xf32>, vector<3x256xf32> -> vector<3x256xf32>
    %22 = arith.addf %19, %21 : vector<3x256xf32>
    %c0_22 = arith.constant 0 : index
    %c0_23 = arith.constant 0 : index
    %23 = vector.load %arg10[%c0_22, %c0_23] : memref<3x1xf32, #tpu.memory_space<vmem>>, vector<3x1xf32>
    %24 = vector.broadcast %23 : vector<3x1xf32> to vector<3x256xf32>
    %25 = arith.addf %22, %24 : vector<3x256xf32>
    %26 = arith.negf %25 : vector<3x256xf32>
    %27 = math.exp %26 : vector<3x256xf32>
    %cst_24 = arith.constant 1.000000e+00 : f32
    %28 = vector.broadcast %cst_24 : f32 to vector<3x256xf32>
    %29 = arith.addf %28, %27 : vector<3x256xf32>
    %30 = arith.divf %28, %29 : vector<3x256xf32>
    %31 = arith.mulf %30, %1 : vector<3x256xf32>
    %cst_25 = arith.constant 1.000000e+00 : f32
    %32 = vector.broadcast %cst_25 : f32 to vector<3x256xf32>
    %33 = arith.subf %32, %30 : vector<3x256xf32>
    %34 = arith.mulf %33, %3 : vector<3x256xf32>
    %35 = arith.addf %31, %34 : vector<3x256xf32>
    %c0_26 = arith.constant 0 : index
    %c0_27 = arith.constant 0 : index
    %c0_28 = arith.constant 0 : index
    %36 = vector.load %arg11[%c0_26, %c0_27, %c0_28] : memref<1x3x256xf32, #tpu.memory_space<vmem>>, vector<1x3x256xf32>
    %37 = vector.shape_cast %36 : vector<1x3x256xf32> to vector<3x256xf32>
    %38 = vector.shape_cast %35 : vector<3x256xf32> to vector<1x3x256xf32>
    tpu.vector_store %arg11[%c0_26, %c0_27, %c0_28], %38 {strides = array<i32>} : memref<1x3x256xf32, #tpu.memory_space<vmem>>, vector<1x3x256xf32>,
    return
  }
  func.func @transform_0(%arg0: i32, %arg1: i32) -> (i32, i32, i32) {
    %c0_i32 = arith.constant 0 : i32
    %c0_i32_0 = arith.constant 0 : i32
    return %arg0, %c0_i32, %arg1 : i32, i32, i32
  }
  func.func @transform_1(%arg0: i32, %arg1: i32) -> (i32, i32, i32) {
    %c0_i32 = arith.constant 0 : i32
    %c0_i32_0 = arith.constant 0 : i32
    return %arg0, %c0_i32, %arg1 : i32, i32, i32
  }
  func.func @transform_2(%arg0: i32, %arg1: i32) -> (i32, i32) {
    %c0_i32 = arith.constant 0 : i32
    %c0_i32_0 = arith.constant 0 : i32
    %c0_i32_1 = arith.constant 0 : i32
    return %c0_i32, %c0_i32_0 : i32, i32
  }
  func.func @transform_3(%arg0: i32, %arg1: i32) -> (i32, i32) {
    %c0_i32 = arith.constant 0 : i32
    %c0_i32_0 = arith.constant 0 : i32
    %c0_i32_1 = arith.constant 0 : i32
    return %c0_i32, %c0_i32_0 : i32, i32
  }
  func.func @transform_4(%arg0: i32, %arg1: i32) -> (i32, i32) {
    %c0_i32 = arith.constant 0 : i32
    %c0_i32_0 = arith.constant 0 : i32
    %c0_i32_1 = arith.constant 0 : i32
    return %c0_i32, %c0_i32_0 : i32, i32
  }
  func.func @transform_5(%arg0: i32, %arg1: i32) -> (i32, i32) {
    %c0_i32 = arith.constant 0 : i32
    %c0_i32_0 = arith.constant 0 : i32
    %c0_i32_1 = arith.constant 0 : i32
    return %c0_i32, %c0_i32_0 : i32, i32
  }
  func.func @transform_6(%arg0: i32, %arg1: i32) -> (i32, i32) {
    %c0_i32 = arith.constant 0 : i32
    %c0_i32_0 = arith.constant 0 : i32
    %c0_i32_1 = arith.constant 0 : i32
    return %c0_i32, %c0_i32_0 : i32, i32
  }
  func.func @transform_7(%arg0: i32, %arg1: i32) -> (i32, i32) {
    %c0_i32 = arith.constant 0 : i32
    %c0_i32_0 = arith.constant 0 : i32
    %c0_i32_1 = arith.constant 0 : i32
    return %c0_i32, %c0_i32_0 : i32, i32
  }
  func.func @transform_8(%arg0: i32, %arg1: i32) -> (i32, i32) {
    %c0_i32 = arith.constant 0 : i32
    %c0_i32_0 = arith.constant 0 : i32
    %c0_i32_1 = arith.constant 0 : i32
    return %c0_i32, %c0_i32_0 : i32, i32
  }
  func.func @transform_9(%arg0: i32, %arg1: i32) -> (i32, i32, i32) {
    %c0_i32 = arith.constant 0 : i32
    %c0_i32_0 = arith.constant 0 : i32
    return %arg0, %c0_i32, %arg1 : i32, i32, i32
  }
}

</mosaic_0001>

<bundles_post_ra>
// kernel: tpu_custom_call.1
= control target key start
LH: loop header
LB: loop body
LE: loop exit
PB: predicated region body
PF: predicated region fallthrough
CT: control target
= control target key end

     0   :  { %s1135_s30 = smov 0   ;;  %s1137_s10 = smov 0   ;;  %s1261_s0 = inlined_call_operand.vmem [shape: f32[2,3,256], index: 0, kind: input, shape index: {}]   ;;  %s1262_s1 = inlined_call_operand.vmem [shape: f32[2,3,256], index: 1, kind: input, shape index: {}]   ;;  %s1263_s2 = inlined_call_operand.vmem [shape: f32[32,3], index: 2, kind: input, shape index: {}]   ;;  %s1264_s3 = inlined_call_operand.vmem [shape: f32[32,1], index: 3, kind: input, shape index: {}]   ;;  %s1265_s4 = inlined_call_operand.vmem [shape: f32[32,3], index: 4, kind: input, shape index: {}]   ;;  %s1266_s5 = inlined_call_operand.vmem [shape: f32[32,1], index: 5, kind: input, shape index: {}]   ;;  %s1267_s6 = inlined_call_operand.vmem [shape: f32[3,32], index: 6, kind: input, shape index: {}]   ;;  %s1268_s7 = inlined_call_operand.vmem [shape: f32[3,32], index: 7, kind: input, shape index: {}]   ;;  %s1269_s8 = inlined_call_operand.vmem [shape: f32[3,1], index: 8, kind: input, shape index: {}]   ;;  %s1270_s9 = inlined_call_operand.vmem [shape: f32[2,3,256], index: 9, kind: output, shape index: {}]  }
   0x1   :  { %s1139_s11 = smov 0  }
   0x2 LB: > { %s31_s12 = sadd.s32 1, %s1077_s10  ;;  %p993_p0 = scmp.ge.s32.totalorder %s1081_s11, 1  ;;  %s1081_s11 = sphi %s1139_s11, %s19_s11   ;;  %s1077_s10 = sphi %s1137_s10, %s1272_s10   ;;  %s1073_s30 = sphi %s1135_s30, %s1271_s30  }
   0x3   : > { %p33_p1 = scmp.ge.s32.totalorder %s31_s12, 2  ;;  %p325_p2 = scmp.lt.s32.totalorder %s1081_s11, 3 }
   0x5   : > { %s1274_s12 = smov (%p33_p1, %s31_s12), 0  ;;  %p326_p3 = pnand %p993_p0, %p325_p2 }
   0x6   : > { %p379_p4 = scmp.lt.s32.totalorder (!%p326_p3), %s1073_s30, 1 }
   0x7   : > { %329 = sbr.rel (%p326_p3) target bundleno = 481 (0x1e1), region = 56 }
   0xc   : > { %v1083_v0 = vmov 0.0   ;;  %s1276_s30 = smov (!%p379_p4, %s1073_s30), 1  ;;  %v1084_v1 = vmov 0   ;;  %v417_v2 = vld [vmem:[%s1264_s3 + $0x18] sm:$0xff]  ;;  %v416_v3 = vld [vmem:[%s1264_s3 + $0x10] sm:$0xff]  ;;  %vm453_vm0 = vcmask 1042432  }
   0xd   : > { %522 = vmatprep.mubr.f32.mxu0 %v1083_v0  ;;  %665 = vmatprep.mubr.f32.mxu1 %v1083_v0  ;;  %s1159_s17 = sshll.u32 %s1276_s30, 3  ;;  %v562_v4 = vld [vmem:[%s1266_s5 + $0x18] sm:$0xff]  ;;  %v561_v5 = vld [vmem:[%s1266_s5 + $0x10] sm:$0xff]  ;;  %v410_v10 = vld [vmem:[%s1263_s2] sm:$0xff]  ;;  %vm440_vm1 = vcmask 23552   ;;  %vm700_vm2 = vcmask 261120  }
   0xe   : > { %1048 = vset.pattern.permute.xlu1 %v1084_v1  ;;  %1047 = vset.pattern.permute.xlu0 %v1084_v1  ;;  %s386_s20 = scalar_lea.vmem %s1261_s0, %s1159_s17  ;;  %s396_s27 = scalar_lea.vmem %s1262_s1, %s1159_s17  ;;  %v555_v11 = vld [vmem:[%s1265_s4] sm:$0xff]  ;;  %v560_v12 = vld [vmem:[%s1266_s5 + $0x8] sm:$0xff]  ;;  %v412_v18 = vld [vmem:[%s1263_s2 + $0x10] sm:$0xff] }
   0xf   : > { %435 = vperm.xlu0 %1047, %v417_v2   ;;  %430 = vperm.xlu1 %1048, %v416_v3   ;;  %v1171_v6 = vld [vmem:[%s386_s20] sm:$0x77]  ;;  %v415_v13 = vld [vmem:[%s1264_s3 + $0x8] sm:$0xff]  ;;  %v557_v19 = vld [vmem:[%s1265_s4 + $0x10] sm:$0xff]  ;;  %s406_s26 = scalar_lea.vmem %s1270_s9, %s1159_s17 }
  0x10   : > { %v1179_v7 = vcombine.high %v1171_v6, %v1171_v6  ;;  %v1181_v8 = vld [vmem:[%s396_s27] sm:$0x77]  ;;  %v411_v14 = vld [vmem:[%s1263_s2 + $0x8] sm:$0xff]  ;;  %v413_v21 = vld [vmem:[%s1263_s2 + $0x18] sm:$0xff] }
  0x11   : > { %v1185_v9 = vcombine.high %v1181_v8, %v1181_v8  ;;  %v556_v15 = vld [vmem:[%s1265_s4 + $0x8] sm:$0xff]  ;;  %v559_v16 = vld [vmem:[%s1266_s5] sm:$0xff]  ;;  %v558_v22 = vld [vmem:[%s1265_s4 + $0x18] sm:$0xff] }
  0x12   : > { %1000 = vmatprep.subr.msk.mxu0 %vm453_vm0, %v1179_v7  ;;  %v414_v17 = vld [vmem:[%s1264_s3] sm:$0xff] }
  0x13   : > { %580 = vperm.xlu0 %1047, %v562_v4   ;;  %575 = vperm.xlu1 %1048, %v561_v5   ;;  %v849_v20 = vld [vmem:[%s1269_s8] sm:$0x7] }
  0x14   : > { %1006 = vmatprep.subr.msk.mxu1 %vm453_vm0, %v1185_v9  ;;  %1001 = vmatpush1.msk.msra.mxu0 %vm453_vm0, %v1171_v6 }
  0x15   : > { %1007 = vmatpush1.msk.msra.mxu1 %vm453_vm0, %v1181_v8  ;;  %1002 = vmatmul.mubr.msk.f32.vlgmr.msra.gmra.mxu0 %vm440_vm1, %v410_v10 }
  0x16   : > { %1008 = vmatmul.mubr.msk.f32.vlgmr.msra.gmra.mxu1 %vm440_vm1, %v555_v11  ;;  %528 = vmatprep.mubr.f32.mxu0 %v1083_v0 }
  0x17   : > { %671 = vmatprep.mubr.f32.mxu1 %v1083_v0  ;;  %570 = vperm.xlu1 %1048, %v560_v12  }
  0x18   : > { %425 = vperm.xlu0 %1047, %v415_v13  }
  0x19   : > { %1003 = vmatmul.mubr.msk.f32.gmra.mxu0 %vm440_vm1, %v411_v14 }
  0x1a   : > { %1009 = vmatmul.mubr.msk.f32.gmra.mxu1 %vm440_vm1, %v556_v15  ;;  %534 = vmatprep.mubr.f32.mxu0 %v1083_v0 }
  0x1b   : > { %677 = vmatprep.mubr.f32.mxu1 %v1083_v0  ;;  %565 = vperm.xlu1 %1048, %v559_v16  }
  0x1c   : > { %420 = vperm.xlu0 %1047, %v414_v17  }
  0x1d   : > { %1004 = vmatmul.mubr.msk.f32.gmra.mxu0 %vm440_vm1, %v412_v18  ;;  %v698_v18 = vld [vmem:[%s1267_s6] sm:$0x7] }
  0x1e   : > { %1010 = vmatmul.mubr.msk.f32.gmra.mxu1 %vm440_vm1, %v557_v19  ;;  %540 = vmatprep.mubr.f32.mxu0 %v1083_v0 }
  0x1f   : > { %683 = vmatprep.mubr.f32.mxu1 %v1083_v0 }
  0x20   : > { %852 = vperm.xlu0 %1047, %v849_v20   ;;  %v699_v20 = vld [vmem:[%s1268_s7] sm:$0x7] }
  0x21   : > { %1005 = vmatmul.mubr.msk.f32.gmra.mxu0 %vm440_vm1, %v413_v21 }
  0x22   : > { %1011 = vmatmul.mubr.msk.f32.gmra.mxu1 %vm440_vm1, %v558_v22  ;;  %768 = vmatprep.mubr.f32.mxu0 %v1083_v0 }
  0x23   : > { %842 = vmatprep.mubr.f32.mxu1 %v1083_v0 }
  0x8a   : > { %v436_v23 = vpop.permute.xlu0 %435  ;;  %v431_v24 = vpop.permute.xlu1 %430 }
  0x8e   : > { %v581_v30 = vpop.permute.xlu0 %580  ;;  %v576_v32 = vpop.permute.xlu1 %575 }
  0x92   : > { %v571_v40 = vpop.permute.xlu1 %570 }
  0x93   : > { %v426_v38 = vpop.permute.xlu0 %425 }
  0x96   : > { %v566_v56 = vpop.permute.xlu1 %565 }
  0x97   : > { %v421_v52 = vpop.permute.xlu0 %420 }
  0xd5   : > { %v524_v25 = vpop.f32.mrf.mxu0 }
  0xd6   : > { %v667_v26 = vpop.f32.mrf.mxu1  ;;  %v525_v1 = vadd.f32 %v524_v25, %v421_v52  ;;  %v853_v25 = vpop.permute.xlu0 %852 }
  0xd7   : > { %v526_v27 = vpop.f32.mrf.mxu0  ;;  %v668_v5 = vadd.f32 %v667_v26, %v566_v56 }
  0xd8   : > { %v669_v28 = vpop.f32.mrf.mxu1  ;;  %v527_v61 = vadd.f32 %v526_v27, %v421_v52  ;;  %v547_v16 = vmax.f32 %v525_v1, 0.0 }
  0xd9   : > { %v530_v29 = vpop.f32.mrf.mxu0  ;;  %v670_v2 = vadd.f32 %v669_v28, %v566_v56  ;;  %v690_v19 = vmax.f32 %v668_v5, 0.0 }
  0xda   : > { %v673_v31 = vpop.f32.mrf.mxu1  ;;  %v531_v57 = vadd.f32 %v530_v29, %v426_v38  ;;  %v548_v14 = vmax.f32 %v527_v61, 0.0 }
  0xdb   : > { %v532_v33 = vpop.f32.mrf.mxu0  ;;  %v674_v62 = vadd.f32 %v673_v31, %v571_v40  ;;  %v691_v17 = vmax.f32 %v670_v2, 0.0 }
  0xdc   : > { %v675_v34 = vpop.f32.mrf.mxu1  ;;  %v533_v53 = vadd.f32 %v532_v33, %v426_v38  ;;  %v549_v12 = vmax.f32 %v531_v57, 0.0 }
  0xdd   : > { %v536_v35 = vpop.f32.mrf.mxu0  ;;  %v676_v58 = vadd.f32 %v675_v34, %v571_v40  ;;  %v692_v15 = vmax.f32 %v674_v62, 0.0 }
  0xde   : > { %v679_v36 = vpop.f32.mrf.mxu1  ;;  %v537_v49 = vadd.f32 %v536_v35, %v431_v24  ;;  %v550_v10 = vmax.f32 %v533_v53, 0.0 }
  0xdf   : > { %v538_v37 = vpop.f32.mrf.mxu0  ;;  %v680_v54 = vadd.f32 %v679_v36, %v576_v32  ;;  %v693_v13 = vmax.f32 %v676_v58, 0.0 }
  0xe0   : > { %v681_v39 = vpop.f32.mrf.mxu1  ;;  %v539_v45 = vadd.f32 %v538_v37, %v431_v24  ;;  %v551_v3 = vmax.f32 %v537_v49, 0.0 }
  0xe1   : > { %v542_v41 = vpop.f32.mrf.mxu0  ;;  %v682_v50 = vadd.f32 %v681_v39, %v576_v32  ;;  %v694_v11 = vmax.f32 %v680_v54, 0.0 }
  0xe2   : > { %v685_v42 = vpop.f32.mrf.mxu1  ;;  %v543_v43 = vadd.f32 %v542_v41, %v436_v23  ;;  %v552_v63 = vmax.f32 %v539_v45, 0.0 }
  0xe3   : > { %v544_v44 = vpop.f32.mrf.mxu0  ;;  %v686_v46 = vadd.f32 %v685_v42, %v581_v30  ;;  %v695_v4 = vmax.f32 %v682_v50, 0.0 }
  0xe4   : > { %v545_v47 = vadd.f32 %v544_v44, %v436_v23  ;;  %v687_v48 = vpop.f32.mrf.mxu1  ;;  %v553_v59 = vmax.f32 %v543_v43, 0.0 }
  0xe5   : > { %v688_v51 = vadd.f32 %v687_v48, %v581_v30  ;;  %v696_v0 = vmax.f32 %v686_v46, 0.0 }
  0xe6   : > { %v554_v55 = vmax.f32 %v545_v47, 0.0 }
  0xe7   : > { %v697_v60 = vmax.f32 %v688_v51, 0.0 }
  0xe8   : > { %802 = vmatprep.subr.mxu1 %v554_v55 }
  0xe9   : > { %728 = vmatprep.subr.mxu0 %v697_v60  ;;  %803 = vmatpush1.msra.mxu1 %v553_v59 }
  0xea   : > { %729 = vmatpush1.msra.mxu0 %v696_v0  ;;  %804 = vmatprep.subr.mxu1 %v552_v63 }
  0xeb   : > { %730 = vmatprep.subr.mxu0 %v695_v4  ;;  %805 = vmatpush1.msra.mxu1 %v551_v3 }
  0xec   : > { %731 = vmatpush1.msra.mxu0 %v694_v11  ;;  %806 = vmatprep.subr.mxu1 %v550_v10 }
  0xed   : > { %732 = vmatprep.subr.mxu0 %v693_v13  ;;  %807 = vmatpush1.msra.mxu1 %v549_v12 }
  0xee   : > { %733 = vmatpush1.msra.mxu0 %v692_v15  ;;  %808 = vmatprep.subr.mxu1 %v548_v14 }
  0xef   : > { %734 = vmatprep.subr.mxu0 %v691_v17  ;;  %809 = vmatpush1.msra.mxu1 %v547_v16 }
  0xf0   : > { %735 = vmatpush1.msra.mxu0 %v690_v19  ;;  %1013 = vmatmul.mubr.msk.f32.vlgmr.msra.gmra.mxu1 %vm700_vm2, %v698_v18 }
  0xf1   : > { %1012 = vmatmul.mubr.msk.f32.vlgmr.msra.gmra.mxu0 %vm700_vm2, %v699_v20 }
 0x1b0   : > { %v844_v21 = vpop.f32.mrf.mxu1 }
 0x1b1   : > { %v770_v22 = vpop.f32.mrf.mxu0 }
 0x1b2   : > { %v845_v23 = vadd.f32 %v844_v21, %v770_v22  ;;  %v846_v24 = vpop.f32.mrf.mxu1 }
 0x1b3   : > { %v772_v26 = vpop.f32.mrf.mxu0 }
 0x1b4   : > { %v855_v27 = vadd.f32 %v853_v25, %v845_v23  ;;  %v847_v28 = vadd.f32 %v846_v24, %v772_v26 }
 0x1b6   : > { %v1014_v29 = vmul.f32 -1.442695, %v855_v27  ;;  %v856_v30 = vadd.f32 %v853_v25, %v847_v28 }
 0x1b8   : > { %1051 = vpow2.f32 %v1014_v29  ;;  %v1015_v31 = vmul.f32 -1.442695, %v856_v30 }
 0x1ba   : > { %1053 = vpow2.f32 %v1015_v31 }
 0x1c5   : > { %v1052_v32 = vpop.eup %1051 }
 0x1c6   : > { %v863_v33 = vadd.f32 1.0, %v1052_v32 }
 0x1c7   : > { %v1054_v34 = vpop.eup %1053 }
 0x1c8   : > { %1055 = vrcp.f32 %v863_v33  ;;  %v864_v35 = vadd.f32 1.0, %v1054_v34 }
 0x1ca   : > { %1057 = vrcp.f32 %v864_v35 }
 0x1d5   : > { %v1056_v36 = vpop.eup %1055 }
 0x1d6   : > { %v872_v37 = vsub.f32 1.0, %v1056_v36  ;;  %v870_v41 = vmul.f32 %v1056_v36, %v1171_v6 }
 0x1d7   : > { %v1058_v38 = vpop.eup %1057 }
 0x1d8   : > { %v875_v39 = vmul.f32 %v872_v37, %v1181_v8  ;;  %v873_v40 = vsub.f32 1.0, %v1058_v38  ;;  %v871_v42 = vmul.f32 %v1058_v38, %v1179_v7 }
 0x1da   : > { %v876_v43 = vmul.f32 %v873_v40, %v1185_v9  ;;  %v877_v44 = vadd.f32 %v875_v39, %v870_v41 }
 0x1dc   : > { %v878_v45 = vadd.f32 %v876_v43, %v871_v42 }
 0x1de   : > { %v881_v46 = vcombine.low %v877_v44, %v878_v45 }
 0x1e0   : > { %883 = vst [vmem:[%s406_s26] sm:$0x77] %v881_v46 }
 0x1e1 PF: > { %s19_s11 = sadd.s32 1, %s1081_s11   ;;  %s1271_s30 = smov %s1077_s10 }
 0x1e2   : > { %p16_p5 = scmp.ge.s32.totalorder %s19_s11, 4   ;;  %s1272_s10 = smov %s1274_s12 }
 0x1e4   :  { %18 = sbr.rel (!%p16_p5) target bundleno = 2 (0x2), region = 89 }

</bundles_post_ra>
